<compile_context>
chip_gen: v6e
topology: v6e:2x2x1
jax: 0.10.0
libtpu: 0.0.40
codegen_flags: <defaults>
</compile_context>

<pallas_src>
import math

import jax
import jax.numpy as jnp
from jax.experimental import pallas as pl
from jax.experimental.pallas import tpu as pltpu


# ------------------------------- kernel --------------------------------------
def _spatial_lstm_kernel(x_ref, w_ref, u_ref, b_ref, hid_ref, hc_ref):
    # x_ref : (T*B, F)  time-major flat rows (rows t*B .. t*B+B-1 are time t)
    # w_ref : (F, 4H)   u_ref : (H, 4H)   b_ref : (1, 4H)
    # hid_ref : (B, T*H)  lane-concatenated hidden sequence (written once)
    # hc_ref  : (B, 2H)   [h_T | c_T] packed tail state (written once)
    TB, _ = x_ref.shape
    H = u_ref.shape[0]
    B = hc_ref.shape[0]
    T = TB // B

    u = u_ref[...]

    # Hoisted input projection (off the recurrent chain): one MXU op for all
    # timesteps, bias folded in.  Only h @ U remains on the serial chain.
    xw = jnp.dot(x_ref[...], w_ref[...],
                 preferred_element_type=jnp.float32) + b_ref[...]        # (T*B, 4H)

    h = jnp.zeros((B, H), jnp.float32)
    c = jnp.zeros((B, H), jnp.float32)
    hs = []
    # T is a small compile-time constant: full unroll -> static slices, the
    # scheduler sees across steps.
    for t in range(T):
        gates = xw[t * B:(t + 1) * B, :] + jnp.dot(
            h, u, preferred_element_type=jnp.float32)                    # (B, 4H)
        sg = jax.nn.sigmoid(gates)                  # one full-width sigmoid (i, f, o)
        g_t = jnp.tanh(gates[:, 2 * H:3 * H])       # tanh only on the g slice (on-chain)
        i_t = sg[:, 0:H]
        f_t = sg[:, H:2 * H]
        o_t = sg[:, 3 * H:4 * H]
        c = f_t * c + i_t * g_t
        h = o_t * jnp.tanh(c)
        hs.append(h)                                # stays in registers

    # Single lane-dense store of the whole hidden sequence:
    # columns [t*H:(t+1)*H] of row b hold h_t for batch b  (T*H = 128 lanes here).
    hid_ref[...] = jnp.concatenate(hs, axis=1)
    # Packed tail state: one store instead of two tiny masked ones.
    hc_ref[...] = jnp.concatenate([h, c], axis=1)


# --------------------------- forward wrapper ----------------------------------
@jax.jit
def spatial_lstm_forward(x, W, U, bias):
    """x: (B, T, F) -> (hidden_seq (B, T, H), (h_T (B, H), c_T (B, H)))."""
    B, T, F = x.shape
    H = U.shape[0]

    # Time-major flatten so the hoisted projection's per-step rows are a
    # contiguous static slice.  (2, 8, 8) -> (16, 8): negligible one-time XLA op.
    x_tm = jnp.transpose(x, (1, 0, 2)).reshape(T * B, F)
    b2 = bias.reshape(1, 4 * H)

    hid, hc = pl.pallas_call(
        _spatial_lstm_kernel,
        grid=(1,),                                   # whole batch in one step (v5e/v6e optimum)
        in_specs=[
            pl.BlockSpec((T * B, F), lambda i: (0, 0)),
            pl.BlockSpec((F, 4 * H), lambda i: (0, 0)),
            pl.BlockSpec((H, 4 * H), lambda i: (0, 0)),
            pl.BlockSpec((1, 4 * H), lambda i: (0, 0)),
        ],
        out_specs=(
            pl.BlockSpec((B, T * H), lambda i: (0, 0)),
            pl.BlockSpec((B, 2 * H), lambda i: (0, 0)),
        ),
        out_shape=(
            jax.ShapeDtypeStruct((B, T * H), jnp.float32),
            jax.ShapeDtypeStruct((B, 2 * H), jnp.float32),
        ),
        compiler_params=pltpu.CompilerParams(
            dimension_semantics=("arbitrary",)),
        # v7x note: to use both TensorCores at larger B, split the batch over
        # grid=(2,) with (B//2)-row blocks and dimension_semantics=("parallel",).
    )(x_tm, W, U, b2)

    hidden_seq = hid.reshape(B, T, H)                # free row-major reshape
    return hidden_seq, (hc[:, :H], hc[:, H:])


# --------------------------- pure-JAX reference -------------------------------
def spatial_lstm_ref(x, W, U, bias):
    B, T, _ = x.shape
    H = U.shape[0]
    h = jnp.zeros((B, H), jnp.float32)
    c = jnp.zeros((B, H), jnp.float32)
    hs = []
    for t in range(T):
        gates = x[:, t, :] @ W + h @ U + bias
        i = jax.nn.sigmoid(gates[:, :H])
        f = jax.nn.sigmoid(gates[:, H:2 * H])
        g = jnp.tanh(gates[:, 2 * H:3 * H])
        o = jax.nn.sigmoid(gates[:, 3 * H:])
        c = f * c + i * g
        h = o * jnp.tanh(c)
        hs.append(h)
    return jnp.stack(hs, axis=1), (h, c)


# ----------------------------------- main -------------------------------------
if __name__ == "__main__":
    input_dim = 8      # feature_num
    hidden_dim = 16
    seq_len = 8        # length
    batch = 2

    key = jax.random.PRNGKey(0)
    kW, kU, kb, kx = jax.random.split(key, 4)
    stdv = 1.0 / math.sqrt(hidden_dim)

    W = jax.random.normal(kW, (input_dim, 4 * hidden_dim), jnp.float32) * stdv
    U = jax.random.normal(kU, (hidden_dim, 4 * hidden_dim), jnp.float32) * stdv
    bias = jax.random.normal(kb, (4 * hidden_dim,), jnp.float32) * stdv
    x = jax.random.normal(kx, (batch, seq_len, input_dim), jnp.float32)

    hidden_seq, (h_n, c_n) = jax.block_until_ready(
        spatial_lstm_forward(x, W, U, bias))

    assert hidden_seq.shape == (batch, seq_len, hidden_dim), hidden_seq.shape
    assert h_n.shape == (batch, hidden_dim), h_n.shape
    assert c_n.shape == (batch, hidden_dim), c_n.shape

    hs_ref, (h_ref, c_ref) = spatial_lstm_ref(x, W, U, bias)
    for name, got, want in (("hidden_seq", hidden_seq, hs_ref),
                            ("h_n", h_n, h_ref),
                            ("c_n", c_n, c_ref)):
        if not jnp.allclose(got, want, atol=1e-3, rtol=1e-3):
            raise AssertionError(f"{name} mismatch:\n pallas={got}\n ref={want}")

    print("KERNEL_OK")
</pallas_src>

<mosaic_0001>
module attributes {stable_mosaic.version = 11 : i64} {
  func.func @_spatial_lstm_kernel(%arg0: i32, %arg1: memref<16x8xf32, #tpu.memory_space<vmem>>, %arg2: memref<8x64xf32, #tpu.memory_space<vmem>>, %arg3: memref<16x64xf32, #tpu.memory_space<vmem>>, %arg4: memref<1x64xf32, #tpu.memory_space<vmem>>, %arg5: memref<2x128xf32, #tpu.memory_space<vmem>>, %arg6: memref<2x32xf32, #tpu.memory_space<vmem>>) attributes {dimension_semantics = [#tpu.dimension_semantics<arbitrary>], iteration_bounds = array<i64: 1>, scalar_prefetch = 0 : i64, scratch_operands = 0 : i64, tpu.core_type = #tpu.core_type<tc>, window_params = [{pipeline_mode = #tpu.pipeline_mode<synchronous>, transform_indices = @transform_0, window_bounds = array<i64: 16, 8>}, {pipeline_mode = #tpu.pipeline_mode<synchronous>, transform_indices = @transform_1, window_bounds = array<i64: 8, 64>}, {pipeline_mode = #tpu.pipeline_mode<synchronous>, transform_indices = @transform_2, window_bounds = array<i64: 16, 64>}, {pipeline_mode = #tpu.pipeline_mode<synchronous>, transform_indices = @transform_3, window_bounds = array<i64: 1, 64>}, {pipeline_mode = #tpu.pipeline_mode<synchronous>, transform_indices = @transform_4, window_bounds = array<i64: 2, 128>}, {pipeline_mode = #tpu.pipeline_mode<synchronous>, transform_indices = @transform_5, window_bounds = array<i64: 2, 32>}]} {
    %c0 = arith.constant 0 : index
    %c0_0 = arith.constant 0 : index
    %0 = vector.load %arg3[%c0, %c0_0] : memref<16x64xf32, #tpu.memory_space<vmem>>, vector<16x64xf32>
    %c0_1 = arith.constant 0 : index
    %c0_2 = arith.constant 0 : index
    %1 = vector.load %arg1[%c0_1, %c0_2] : memref<16x8xf32, #tpu.memory_space<vmem>>, vector<16x8xf32>
    %c0_3 = arith.constant 0 : index
    %c0_4 = arith.constant 0 : index
    %2 = vector.load %arg2[%c0_3, %c0_4] : memref<8x64xf32, #tpu.memory_space<vmem>>, vector<8x64xf32>
    %cst = arith.constant dense<0.000000e+00> : vector<16x64xf32>
    %3 = tpu.matmul %1, %2, %cst {dimension_numbers = #tpu.dot_dimension_numbers<[1], [0], [0], [1], [0, 0, 1, 1], [], []>} : vector<16x8xf32>, vector<8x64xf32>, vector<16x64xf32> -> vector<16x64xf32>
    %c0_5 = arith.constant 0 : index
    %c0_6 = arith.constant 0 : index
    %4 = vector.load %arg4[%c0_5, %c0_6] : memref<1x64xf32, #tpu.memory_space<vmem>>, vector<1x64xf32>
    %5 = vector.broadcast %4 : vector<1x64xf32> to vector<16x64xf32>
    %6 = arith.addf %3, %5 : vector<16x64xf32>
    %cst_7 = arith.constant 0.000000e+00 : f32
    %7 = vector.broadcast %cst_7 : f32 to vector<2x16xf32>
    %cst_8 = arith.constant 0.000000e+00 : f32
    %8 = vector.broadcast %cst_8 : f32 to vector<2x16xf32>
    %9 = vector.extract_strided_slice %6 {offsets = [0, 0], sizes = [2, 64], strides = [1, 1]} : vector<16x64xf32> to vector<2x64xf32>
    %cst_9 = arith.constant dense<0.000000e+00> : vector<2x64xf32>
    %10 = tpu.matmul %7, %0, %cst_9 {dimension_numbers = #tpu.dot_dimension_numbers<[1], [0], [0], [1], [0, 0, 1, 1], [], []>} : vector<2x16xf32>, vector<16x64xf32>, vector<2x64xf32> -> vector<2x64xf32>
    %11 = arith.addf %9, %10 : vector<2x64xf32>
    %12 = arith.negf %11 : vector<2x64xf32>
    %13 = math.exp %12 : vector<2x64xf32>
    %cst_10 = arith.constant 1.000000e+00 : f32
    %14 = vector.broadcast %cst_10 : f32 to vector<2x64xf32>
    %15 = arith.addf %14, %13 : vector<2x64xf32>
    %16 = arith.divf %14, %15 : vector<2x64xf32>
    %17 = vector.extract_strided_slice %11 {offsets = [0, 32], sizes = [2, 16], strides = [1, 1]} : vector<2x64xf32> to vector<2x16xf32>
    %18 = math.tanh %17 : vector<2x16xf32>
    %19 = vector.extract_strided_slice %16 {offsets = [0, 0], sizes = [2, 16], strides = [1, 1]} : vector<2x64xf32> to vector<2x16xf32>
    %20 = vector.extract_strided_slice %16 {offsets = [0, 16], sizes = [2, 16], strides = [1, 1]} : vector<2x64xf32> to vector<2x16xf32>
    %21 = vector.extract_strided_slice %16 {offsets = [0, 48], sizes = [2, 16], strides = [1, 1]} : vector<2x64xf32> to vector<2x16xf32>
    %22 = arith.mulf %20, %8 : vector<2x16xf32>
    %23 = arith.mulf %19, %18 : vector<2x16xf32>
    %24 = arith.addf %22, %23 : vector<2x16xf32>
    %25 = math.tanh %24 : vector<2x16xf32>
    %26 = arith.mulf %21, %25 : vector<2x16xf32>
    %27 = vector.extract_strided_slice %6 {offsets = [2, 0], sizes = [2, 64], strides = [1, 1]} : vector<16x64xf32> to vector<2x64xf32>
    %cst_11 = arith.constant dense<0.000000e+00> : vector<2x64xf32>
    %28 = tpu.matmul %26, %0, %cst_11 {dimension_numbers = #tpu.dot_dimension_numbers<[1], [0], [0], [1], [0, 0, 1, 1], [], []>} : vector<2x16xf32>, vector<16x64xf32>, vector<2x64xf32> -> vector<2x64xf32>
    %29 = arith.addf %27, %28 : vector<2x64xf32>
    %30 = arith.negf %29 : vector<2x64xf32>
    %31 = math.exp %30 : vector<2x64xf32>
    %cst_12 = arith.constant 1.000000e+00 : f32
    %32 = vector.broadcast %cst_12 : f32 to vector<2x64xf32>
    %33 = arith.addf %32, %31 : vector<2x64xf32>
    %34 = arith.divf %32, %33 : vector<2x64xf32>
    %35 = vector.extract_strided_slice %29 {offsets = [0, 32], sizes = [2, 16], strides = [1, 1]} : vector<2x64xf32> to vector<2x16xf32>
    %36 = math.tanh %35 : vector<2x16xf32>
    %37 = vector.extract_strided_slice %34 {offsets = [0, 0], sizes = [2, 16], strides = [1, 1]} : vector<2x64xf32> to vector<2x16xf32>
    %38 = vector.extract_strided_slice %34 {offsets = [0, 16], sizes = [2, 16], strides = [1, 1]} : vector<2x64xf32> to vector<2x16xf32>
    %39 = vector.extract_strided_slice %34 {offsets = [0, 48], sizes = [2, 16], strides = [1, 1]} : vector<2x64xf32> to vector<2x16xf32>
    %40 = arith.mulf %38, %24 : vector<2x16xf32>
    %41 = arith.mulf %37, %36 : vector<2x16xf32>
    %42 = arith.addf %40, %41 : vector<2x16xf32>
    %43 = math.tanh %42 : vector<2x16xf32>
    %44 = arith.mulf %39, %43 : vector<2x16xf32>
    %45 = vector.extract_strided_slice %6 {offsets = [4, 0], sizes = [2, 64], strides = [1, 1]} : vector<16x64xf32> to vector<2x64xf32>
    %cst_13 = arith.constant dense<0.000000e+00> : vector<2x64xf32>
    %46 = tpu.matmul %44, %0, %cst_13 {dimension_numbers = #tpu.dot_dimension_numbers<[1], [0], [0], [1], [0, 0, 1, 1], [], []>} : vector<2x16xf32>, vector<16x64xf32>, vector<2x64xf32> -> vector<2x64xf32>
    %47 = arith.addf %45, %46 : vector<2x64xf32>
    %48 = arith.negf %47 : vector<2x64xf32>
    %49 = math.exp %48 : vector<2x64xf32>
    %cst_14 = arith.constant 1.000000e+00 : f32
    %50 = vector.broadcast %cst_14 : f32 to vector<2x64xf32>
    %51 = arith.addf %50, %49 : vector<2x64xf32>
    %52 = arith.divf %50, %51 : vector<2x64xf32>
    %53 = vector.extract_strided_slice %47 {offsets = [0, 32], sizes = [2, 16], strides = [1, 1]} : vector<2x64xf32> to vector<2x16xf32>
    %54 = math.tanh %53 : vector<2x16xf32>
    %55 = vector.extract_strided_slice %52 {offsets = [0, 0], sizes = [2, 16], strides = [1, 1]} : vector<2x64xf32> to vector<2x16xf32>
    %56 = vector.extract_strided_slice %52 {offsets = [0, 16], sizes = [2, 16], strides = [1, 1]} : vector<2x64xf32> to vector<2x16xf32>
    %57 = vector.extract_strided_slice %52 {offsets = [0, 48], sizes = [2, 16], strides = [1, 1]} : vector<2x64xf32> to vector<2x16xf32>
    %58 = arith.mulf %56, %42 : vector<2x16xf32>
    %59 = arith.mulf %55, %54 : vector<2x16xf32>
    %60 = arith.addf %58, %59 : vector<2x16xf32>
    %61 = math.tanh %60 : vector<2x16xf32>
    %62 = arith.mulf %57, %61 : vector<2x16xf32>
    %63 = vector.extract_strided_slice %6 {offsets = [6, 0], sizes = [2, 64], strides = [1, 1]} : vector<16x64xf32> to vector<2x64xf32>
    %cst_15 = arith.constant dense<0.000000e+00> : vector<2x64xf32>
    %64 = tpu.matmul %62, %0, %cst_15 {dimension_numbers = #tpu.dot_dimension_numbers<[1], [0], [0], [1], [0, 0, 1, 1], [], []>} : vector<2x16xf32>, vector<16x64xf32>, vector<2x64xf32> -> vector<2x64xf32>
    %65 = arith.addf %63, %64 : vector<2x64xf32>
    %66 = arith.negf %65 : vector<2x64xf32>
    %67 = math.exp %66 : vector<2x64xf32>
    %cst_16 = arith.constant 1.000000e+00 : f32
    %68 = vector.broadcast %cst_16 : f32 to vector<2x64xf32>
    %69 = arith.addf %68, %67 : vector<2x64xf32>
    %70 = arith.divf %68, %69 : vector<2x64xf32>
    %71 = vector.extract_strided_slice %65 {offsets = [0, 32], sizes = [2, 16], strides = [1, 1]} : vector<2x64xf32> to vector<2x16xf32>
    %72 = math.tanh %71 : vector<2x16xf32>
    %73 = vector.extract_strided_slice %70 {offsets = [0, 0], sizes = [2, 16], strides = [1, 1]} : vector<2x64xf32> to vector<2x16xf32>
    %74 = vector.extract_strided_slice %70 {offsets = [0, 16], sizes = [2, 16], strides = [1, 1]} : vector<2x64xf32> to vector<2x16xf32>
    %75 = vector.extract_strided_slice %70 {offsets = [0, 48], sizes = [2, 16], strides = [1, 1]} : vector<2x64xf32> to vector<2x16xf32>
    %76 = arith.mulf %74, %60 : vector<2x16xf32>
    %77 = arith.mulf %73, %72 : vector<2x16xf32>
    %78 = arith.addf %76, %77 : vector<2x16xf32>
    %79 = math.tanh %78 : vector<2x16xf32>
    %80 = arith.mulf %75, %79 : vector<2x16xf32>
    %81 = vector.extract_strided_slice %6 {offsets = [8, 0], sizes = [2, 64], strides = [1, 1]} : vector<16x64xf32> to vector<2x64xf32>
    %cst_17 = arith.constant dense<0.000000e+00> : vector<2x64xf32>
    %82 = tpu.matmul %80, %0, %cst_17 {dimension_numbers = #tpu.dot_dimension_numbers<[1], [0], [0], [1], [0, 0, 1, 1], [], []>} : vector<2x16xf32>, vector<16x64xf32>, vector<2x64xf32> -> vector<2x64xf32>
    %83 = arith.addf %81, %82 : vector<2x64xf32>
    %84 = arith.negf %83 : vector<2x64xf32>
    %85 = math.exp %84 : vector<2x64xf32>
    %cst_18 = arith.constant 1.000000e+00 : f32
    %86 = vector.broadcast %cst_18 : f32 to vector<2x64xf32>
    %87 = arith.addf %86, %85 : vector<2x64xf32>
    %88 = arith.divf %86, %87 : vector<2x64xf32>
    %89 = vector.extract_strided_slice %83 {offsets = [0, 32], sizes = [2, 16], strides = [1, 1]} : vector<2x64xf32> to vector<2x16xf32>
    %90 = math.tanh %89 : vector<2x16xf32>
    %91 = vector.extract_strided_slice %88 {offsets = [0, 0], sizes = [2, 16], strides = [1, 1]} : vector<2x64xf32> to vector<2x16xf32>
    %92 = vector.extract_strided_slice %88 {offsets = [0, 16], sizes = [2, 16], strides = [1, 1]} : vector<2x64xf32> to vector<2x16xf32>
    %93 = vector.extract_strided_slice %88 {offsets = [0, 48], sizes = [2, 16], strides = [1, 1]} : vector<2x64xf32> to vector<2x16xf32>
    %94 = arith.mulf %92, %78 : vector<2x16xf32>
    %95 = arith.mulf %91, %90 : vector<2x16xf32>
    %96 = arith.addf %94, %95 : vector<2x16xf32>
    %97 = math.tanh %96 : vector<2x16xf32>
    %98 = arith.mulf %93, %97 : vector<2x16xf32>
    %99 = vector.extract_strided_slice %6 {offsets = [10, 0], sizes = [2, 64], strides = [1, 1]} : vector<16x64xf32> to vector<2x64xf32>
    %cst_19 = arith.constant dense<0.000000e+00> : vector<2x64xf32>
    %100 = tpu.matmul %98, %0, %cst_19 {dimension_numbers = #tpu.dot_dimension_numbers<[1], [0], [0], [1], [0, 0, 1, 1], [], []>} : vector<2x16xf32>, vector<16x64xf32>, vector<2x64xf32> -> vector<2x64xf32>
    %101 = arith.addf %99, %100 : vector<2x64xf32>
    %102 = arith.negf %101 : vector<2x64xf32>
    %103 = math.exp %102 : vector<2x64xf32>
    %cst_20 = arith.constant 1.000000e+00 : f32
    %104 = vector.broadcast %cst_20 : f32 to vector<2x64xf32>
    %105 = arith.addf %104, %103 : vector<2x64xf32>
    %106 = arith.divf %104, %105 : vector<2x64xf32>
    %107 = vector.extract_strided_slice %101 {offsets = [0, 32], sizes = [2, 16], strides = [1, 1]} : vector<2x64xf32> to vector<2x16xf32>
    %108 = math.tanh %107 : vector<2x16xf32>
    %109 = vector.extract_strided_slice %106 {offsets = [0, 0], sizes = [2, 16], strides = [1, 1]} : vector<2x64xf32> to vector<2x16xf32>
    %110 = vector.extract_strided_slice %106 {offsets = [0, 16], sizes = [2, 16], strides = [1, 1]} : vector<2x64xf32> to vector<2x16xf32>
    %111 = vector.extract_strided_slice %106 {offsets = [0, 48], sizes = [2, 16], strides = [1, 1]} : vector<2x64xf32> to vector<2x16xf32>
    %112 = arith.mulf %110, %96 : vector<2x16xf32>
    %113 = arith.mulf %109, %108 : vector<2x16xf32>
    %114 = arith.addf %112, %113 : vector<2x16xf32>
    %115 = math.tanh %114 : vector<2x16xf32>
    %116 = arith.mulf %111, %115 : vector<2x16xf32>
    %117 = vector.extract_strided_slice %6 {offsets = [12, 0], sizes = [2, 64], strides = [1, 1]} : vector<16x64xf32> to vector<2x64xf32>
    %cst_21 = arith.constant dense<0.000000e+00> : vector<2x64xf32>
    %118 = tpu.matmul %116, %0, %cst_21 {dimension_numbers = #tpu.dot_dimension_numbers<[1], [0], [0], [1], [0, 0, 1, 1], [], []>} : vector<2x16xf32>, vector<16x64xf32>, vector<2x64xf32> -> vector<2x64xf32>
    %119 = arith.addf %117, %118 : vector<2x64xf32>
    %120 = arith.negf %119 : vector<2x64xf32>
    %121 = math.exp %120 : vector<2x64xf32>
    %cst_22 = arith.constant 1.000000e+00 : f32
    %122 = vector.broadcast %cst_22 : f32 to vector<2x64xf32>
    %123 = arith.addf %122, %121 : vector<2x64xf32>
    %124 = arith.divf %122, %123 : vector<2x64xf32>
    %125 = vector.extract_strided_slice %119 {offsets = [0, 32], sizes = [2, 16], strides = [1, 1]} : vector<2x64xf32> to vector<2x16xf32>
    %126 = math.tanh %125 : vector<2x16xf32>
    %127 = vector.extract_strided_slice %124 {offsets = [0, 0], sizes = [2, 16], strides = [1, 1]} : vector<2x64xf32> to vector<2x16xf32>
    %128 = vector.extract_strided_slice %124 {offsets = [0, 16], sizes = [2, 16], strides = [1, 1]} : vector<2x64xf32> to vector<2x16xf32>
    %129 = vector.extract_strided_slice %124 {offsets = [0, 48], sizes = [2, 16], strides = [1, 1]} : vector<2x64xf32> to vector<2x16xf32>
    %130 = arith.mulf %128, %114 : vector<2x16xf32>
    %131 = arith.mulf %127, %126 : vector<2x16xf32>
    %132 = arith.addf %130, %131 : vector<2x16xf32>
    %133 = math.tanh %132 : vector<2x16xf32>
    %134 = arith.mulf %129, %133 : vector<2x16xf32>
    %135 = vector.extract_strided_slice %6 {offsets = [14, 0], sizes = [2, 64], strides = [1, 1]} : vector<16x64xf32> to vector<2x64xf32>
    %cst_23 = arith.constant dense<0.000000e+00> : vector<2x64xf32>
    %136 = tpu.matmul %134, %0, %cst_23 {dimension_numbers = #tpu.dot_dimension_numbers<[1], [0], [0], [1], [0, 0, 1, 1], [], []>} : vector<2x16xf32>, vector<16x64xf32>, vector<2x64xf32> -> vector<2x64xf32>
    %137 = arith.addf %135, %136 : vector<2x64xf32>
    %138 = arith.negf %137 : vector<2x64xf32>
    %139 = math.exp %138 : vector<2x64xf32>
    %cst_24 = arith.constant 1.000000e+00 : f32
    %140 = vector.broadcast %cst_24 : f32 to vector<2x64xf32>
    %141 = arith.addf %140, %139 : vector<2x64xf32>
    %142 = arith.divf %140, %141 : vector<2x64xf32>
    %143 = vector.extract_strided_slice %137 {offsets = [0, 32], sizes = [2, 16], strides = [1, 1]} : vector<2x64xf32> to vector<2x16xf32>
    %144 = math.tanh %143 : vector<2x16xf32>
    %145 = vector.extract_strided_slice %142 {offsets = [0, 0], sizes = [2, 16], strides = [1, 1]} : vector<2x64xf32> to vector<2x16xf32>
    %146 = vector.extract_strided_slice %142 {offsets = [0, 16], sizes = [2, 16], strides = [1, 1]} : vector<2x64xf32> to vector<2x16xf32>
    %147 = vector.extract_strided_slice %142 {offsets = [0, 48], sizes = [2, 16], strides = [1, 1]} : vector<2x64xf32> to vector<2x16xf32>
    %148 = arith.mulf %146, %132 : vector<2x16xf32>
    %149 = arith.mulf %145, %144 : vector<2x16xf32>
    %150 = arith.addf %148, %149 : vector<2x16xf32>
    %151 = math.tanh %150 : vector<2x16xf32>
    %152 = arith.mulf %147, %151 : vector<2x16xf32>
    %153 = tpu.concatenate %26, %44, %62, %80, %98, %116, %134, %152 in 1 : vector<2x16xf32>, vector<2x16xf32>, vector<2x16xf32>, vector<2x16xf32>, vector<2x16xf32>, vector<2x16xf32>, vector<2x16xf32>, vector<2x16xf32> -> vector<2x128xf32>
    %c0_25 = arith.constant 0 : index
    %c0_26 = arith.constant 0 : index
    %154 = vector.load %arg5[%c0_25, %c0_26] : memref<2x128xf32, #tpu.memory_space<vmem>>, vector<2x128xf32>
    tpu.vector_store %arg5[%c0_25, %c0_26], %153 {strides = array<i32>} : memref<2x128xf32, #tpu.memory_space<vmem>>, vector<2x128xf32>,
    %155 = tpu.concatenate %152, %150 in 1 : vector<2x16xf32>, vector<2x16xf32> -> vector<2x32xf32>
    %c0_27 = arith.constant 0 : index
    %c0_28 = arith.constant 0 : index
    %156 = vector.load %arg6[%c0_27, %c0_28] : memref<2x32xf32, #tpu.memory_space<vmem>>, vector<2x32xf32>
    tpu.vector_store %arg6[%c0_27, %c0_28], %155 {strides = array<i32>} : memref<2x32xf32, #tpu.memory_space<vmem>>, vector<2x32xf32>,
    return
  }
  func.func @transform_0(%arg0: i32) -> (i32, i32) {
    %c0_i32 = arith.constant 0 : i32
    %c0_i32_0 = arith.constant 0 : i32
    %c0_i32_1 = arith.constant 0 : i32
    return %c0_i32, %c0_i32_0 : i32, i32
  }
  func.func @transform_1(%arg0: i32) -> (i32, i32) {
    %c0_i32 = arith.constant 0 : i32
    %c0_i32_0 = arith.constant 0 : i32
    %c0_i32_1 = arith.constant 0 : i32
    return %c0_i32, %c0_i32_0 : i32, i32
  }
  func.func @transform_2(%arg0: i32) -> (i32, i32) {
    %c0_i32 = arith.constant 0 : i32
    %c0_i32_0 = arith.constant 0 : i32
    %c0_i32_1 = arith.constant 0 : i32
    return %c0_i32, %c0_i32_0 : i32, i32
  }
  func.func @transform_3(%arg0: i32) -> (i32, i32) {
    %c0_i32 = arith.constant 0 : i32
    %c0_i32_0 = arith.constant 0 : i32
    %c0_i32_1 = arith.constant 0 : i32
    return %c0_i32, %c0_i32_0 : i32, i32
  }
  func.func @transform_4(%arg0: i32) -> (i32, i32) {
    %c0_i32 = arith.constant 0 : i32
    %c0_i32_0 = arith.constant 0 : i32
    %c0_i32_1 = arith.constant 0 : i32
    return %c0_i32, %c0_i32_0 : i32, i32
  }
  func.func @transform_5(%arg0: i32) -> (i32, i32) {
    %c0_i32 = arith.constant 0 : i32
    %c0_i32_0 = arith.constant 0 : i32
    %c0_i32_1 = arith.constant 0 : i32
    return %c0_i32, %c0_i32_0 : i32, i32
  }
}

</mosaic_0001>

<bundles_post_ra>
// kernel: spatial_lstm_forward.1
= control target key start
LH: loop header
LB: loop body
LE: loop exit
PB: predicated region body
PF: predicated region fallthrough
CT: control target
= control target key end

     0   :  { %vm31_vm0 = vcmask 64512   ;;  %v1185_v1 = vmov 0.0   ;;  %vm1186_vm1 = vmmov 0   ;;  %s1187_s27 = smov 96   ;;  %s1189_s28 = smov 32   ;;  %vm113_vm2 = vcmask 130048   ;;  %s1389_s1 = inlined_call_operand.vmem [shape: f32[8,64], index: 1, kind: input, shape index: {}]   ;;  %s1390_s0 = inlined_call_operand.vmem [shape: f32[16,8], index: 0, kind: input, shape index: {}]   ;;  %s1391_s2 = inlined_call_operand.vmem [shape: f32[16,64], index: 2, kind: input, shape index: {}]   ;;  %s1392_s3 = inlined_call_operand.vmem [shape: f32[1,64], index: 3, kind: input, shape index: {}]   ;;  %s1393_s5 = inlined_call_operand.vmem [shape: f32[2,32], index: 5, kind: output, shape index: {1}]   ;;  %s1394_s4 = inlined_call_operand.vmem [shape: f32[2,128], index: 4, kind: output, shape index: {0}]  }
   0x1   :  { %v23_v0 = vld [vmem:[%s1389_s1] sm:$0xff]  ;;  %1056 = vmatprep.subr.mxu1 %v1185_v1  ;;  %v22_v3 = vld [vmem:[%s1390_s0 + $0x8] sm:$0xff]  ;;  %1060 = vmatprep.mubr.msk.f32.mxu1 %vm1186_vm1, %v1185_v1  ;;  %s1190_s29 = smov 80   ;;  %s1191_s30 = smov 48   ;;  %vm979_vm3 = vcmask 261120   ;;  %vm981_vm4 = vcmask 392192  }
   0x2   :  { %v21_v2 = vld [vmem:[%s1390_s0] sm:$0xff]  ;;  %1051 = vmatprep.subr.mxu0 %v23_v0  ;;  %v1239_v4 = vld [vmem:[%s1391_s2 + $0x8] sm:$0xff]  ;;  %s1192_s6 = smov 112   ;;  %s1193_s7 = smov 64   ;;  %vm983_vm5 = vcmask 523264   ;;  %vm985_vm6 = vcmask 654336  }
   0x3   :  { %1053 = vmatprep.mubr.msk.f32.mxu0 %vm31_vm0, %v21_v2  ;;  %v1244_v5 = vld [vmem:[%s1391_s2] sm:$0xff]  ;;  %1052 = vmatpush3.msra.mxu0 %v23_v0  ;;  %vm996_vm7 = vcmask 261126   ;;  %vm987_vm8 = vcmask 785408   ;;  %vm989_vm9 = vcmask 916480  }
   0x4   :  { %1057 = vmatpush3.msra.mxu1 %v1239_v4  ;;  %1054 = vmatmul.mubr.msk.f32.vlgmr.msra.gmra.mxu0 %vm31_vm0, %v22_v3  ;;  %v1006_v6 = vld [vmem:[%s1392_s3] ss:$0 sm:$0xff]  ;;  %s1188_s3 = smov 16  }
   0x5   :  { %1058 = vmatprep.subr.mxu1 %v1185_v1  ;;  %1063 = vmatprep.subr.mxu0 %v1185_v1 }
   0x6   :  { %1059 = vmatpush3.msra.mxu1 %v1244_v5  ;;  %1064 = vmatpush3.msra.mxu0 %v1239_v4 }
   0x7   :  { %1061 = vmatmul.mubr.f32.vlgmr.msra.gmra.mxu1 %v1185_v1  ;;  %1065 = vmatprep.subr.mxu0 %v1185_v1 }
   0x8   :  { %1067 = vmatprep.mubr.msk.f32.mxu0 %vm1186_vm1, %v1185_v1  ;;  %1066 = vmatpush3.msra.mxu0 %v1244_v5 }
   0x9   :  { %1070 = vmatprep.subr.mxu1 %v1185_v1  ;;  %1074 = vmatprep.mubr.msk.f32.mxu1 %vm1186_vm1, %v1185_v1 }
   0xa   :  { %1071 = vmatpush3.msra.mxu1 %v1239_v4  ;;  %1077 = vmatprep.subr.mxu0 %v1185_v1 }
   0xb   :  { %1072 = vmatprep.subr.mxu1 %v1185_v1 }
   0xc   :  { %1073 = vmatpush3.msra.mxu1 %v1244_v5 }
   0xd   :  { %1084 = vmatprep.subr.mxu1 %v1185_v1 }
  0xc4   :  { %v1055_v7 = vpop.f32.mrf.mxu0 }
  0xc5   :  { %v1267_v8 = vadd.f32 %v1055_v7, %v1006_v6 }
  0xc6   :  { %v104_v9 = vpop.f32.mrf.mxu0 }
  0xc7   :  { %v183_v10 = vpop.f32.mrf.mxu1  ;;  %v1269_v11 = vadd.f32 %v1006_v6, %v104_v9 }
  0xc9   :  { %v1062_v12 = vpop.f32.mrf.mxu1  ;;  %v187_v13 = vadd.f32 %v183_v10, %v1269_v11 }
  0xcb   :  { %1121 = vtanh.f32 %v187_v13  ;;  %v1009_v15 = vmul.f32 -1.442695, %v187_v13 }
  0xcd   :  { %1123 = vpow2.f32 %v1009_v15 }
  0xd8   :  { %v1122_v14 = vpop.eup %1121 }
  0xd9   :  { %197 = vrot.lane.b32.xlu0 %v1122_v14, %s1187_s27 }
  0xda   :  { %v1124_v16 = vpop.eup %1123 }
  0xdb   :  { %v191_v17 = vadd.f32 1.0, %v1124_v16 }
  0xdd   :  { %1125 = vrcp.f32 %v191_v17 }
  0xea   :  { %v1126_v18 = vpop.eup %1125 }
  0xeb   :  { %v195_v21 = vmul.f32 0.0, %v1126_v18 }
 0x14b   :  { %v198_v19 = vpop.permute.xlu0 %197 }
 0x14c   :  { %v200_v20 = vmul.f32 %v1126_v18, %v198_v19 }
 0x14e   :  { %202 = vrot.lane.b32.xlu0 %v200_v20, %s1188_s3 }
 0x1c0   :  { %v203_v22 = vpop.permute.xlu0 %202 }
 0x1c1   :  { %v205_v23 = vadd.f32 %v203_v22, %v195_v21 }
 0x1c3   :  { %1127 = vtanh.f32 %v205_v23  ;;  %v299_v39 = vrot.slane %v205_v23, 6 }
 0x1d0   :  { %v1128_v24 = vpop.eup %1127 }
 0x1d1   :  { %208 = vrot.lane.b32.xlu1 %v1128_v24, %s1189_s28 }
 0x243   :  { %v209_v25 = vpop.permute.xlu1 %208 }
 0x244   :  { %v211_v26 = vmul.f32 %v1126_v18, %v209_v25 }
 0x246   :  { %213 = vrot.lane.b32.xlu1 %v211_v26, %s1190_s29 }
 0x2b8   :  { %v1276_v27 = vpop.permute.xlu1 %213 }
 0x2b9   :  { %1068 = vmatmul.mubr.msk.f32.vlgmr.msra.gmra.mxu0 %vm113_vm2, %v1276_v27 }
 0x2ba   :  { %1078 = vmatpush3.msra.mxu0 %v1239_v4  ;;  %1081 = vmatprep.mubr.msk.f32.mxu0 %vm1186_vm1, %v1185_v1 }
 0x2bb   :  { %1079 = vmatprep.subr.mxu0 %v1185_v1 }
 0x2bc   :  { %1080 = vmatpush3.msra.mxu0 %v1244_v5 }
 0x2bd   :  { %1091 = vmatprep.subr.mxu0 %v1185_v1 }
 0x379   :  { %v283_v28 = vpop.f32.mrf.mxu0 }
 0x37a   :  { %v288_v29 = vrot.slane %v283_v28, 6 }
 0x37b   :  { %v1069_v30 = vpop.f32.mrf.mxu0 }
 0x37c   :  { %v290_v31 = vadd.f32 %v288_v29, %v1269_v11 }
 0x37e   :  { %1129 = vtanh.f32 %v290_v31  ;;  %v1011_v33 = vmul.f32 -1.442695, %v290_v31 }
 0x380   :  { %1131 = vpow2.f32 %v1011_v33 }
 0x38b   :  { %v1130_v32 = vpop.eup %1129 }
 0x38c   :  { %303 = vrot.lane.b32.xlu0 %v1130_v32, %s1187_s27 }
 0x38d   :  { %v1132_v34 = vpop.eup %1131 }
 0x38e   :  { %v294_v35 = vadd.f32 1.0, %v1132_v34 }
 0x390   :  { %1133 = vrcp.f32 %v294_v35 }
 0x39d   :  { %v1134_v36 = vpop.eup %1133 }
 0x39e   :  { %v301_v40 = vmul.f32 %v1134_v36, %v299_v39 }
 0x3fe   :  { %v304_v37 = vpop.permute.xlu0 %303 }
 0x3ff   :  { %v306_v38 = vmul.f32 %v1134_v36, %v304_v37 }
 0x401   :  { %308 = vrot.lane.b32.xlu1 %v306_v38, %s1188_s3 }
 0x473   :  { %v309_v41 = vpop.permute.xlu1 %308 }
 0x474   :  { %v311_v42 = vadd.f32 %v309_v41, %v301_v40 }
 0x476   :  { %1135 = vtanh.f32 %v311_v42  ;;  %v406_v59 = vrot.slane %v311_v42, 6 }
 0x483   :  { %v1136_v43 = vpop.eup %1135 }
 0x484   :  { %314 = vrot.lane.b32.xlu0 %v1136_v43, %s1189_s28 }
 0x4f6   :  { %v315_v44 = vpop.permute.xlu0 %314 }
 0x4f7   :  { %v1290_v45 = vmul.f32 %v1134_v36, %v315_v44 }
 0x4f9   :  { %v319_v46 = vrot.slane %v1290_v45, 2 }
 0x4fb   :  { %320 = vrot.lane.b32.xlu1 %v319_v46, %s1190_s29 }
 0x56d   :  { %v321_v47 = vpop.permute.xlu1 %320 }
 0x56e   :  { %1075 = vmatmul.mubr.msk.f32.vlgmr.msra.gmra.mxu1 %vm113_vm2, %v321_v47 }
 0x56f   :  { %1085 = vmatpush3.msra.mxu1 %v1239_v4  ;;  %1088 = vmatprep.mubr.msk.f32.mxu1 %vm1186_vm1, %v1185_v1 }
 0x570   :  { %1086 = vmatprep.subr.mxu1 %v1185_v1 }
 0x571   :  { %1087 = vmatpush3.msra.mxu1 %v1244_v5 }
 0x572   :  { %1098 = vmatprep.subr.mxu1 %v1185_v1 }
 0x62e   :  { %v390_v48 = vpop.f32.mrf.mxu1 }
 0x62f   :  { %v395_v49 = vrot.slane %v390_v48, 4 }
 0x630   :  { %v1076_v50 = vpop.f32.mrf.mxu1 }
 0x631   :  { %v397_v51 = vadd.f32 %v395_v49, %v1269_v11 }
 0x633   :  { %1137 = vtanh.f32 %v397_v51  ;;  %v1013_v53 = vmul.f32 -1.442695, %v397_v51 }
 0x635   :  { %1139 = vpow2.f32 %v1013_v53 }
 0x640   :  { %v1138_v52 = vpop.eup %1137 }
 0x641   :  { %410 = vrot.lane.b32.xlu0 %v1138_v52, %s1187_s27 }
 0x642   :  { %v1140_v54 = vpop.eup %1139 }
 0x643   :  { %v401_v55 = vadd.f32 1.0, %v1140_v54 }
 0x645   :  { %1141 = vrcp.f32 %v401_v55 }
 0x652   :  { %v1142_v56 = vpop.eup %1141 }
 0x653   :  { %v408_v60 = vmul.f32 %v1142_v56, %v406_v59 }
 0x6b3   :  { %v411_v57 = vpop.permute.xlu0 %410 }
 0x6b4   :  { %v413_v58 = vmul.f32 %v1142_v56, %v411_v57 }
 0x6b6   :  { %415 = vrot.lane.b32.xlu1 %v413_v58, %s1188_s3 }
 0x728   :  { %v416_v61 = vpop.permute.xlu1 %415 }
 0x729   :  { %v418_v62 = vadd.f32 %v416_v61, %v408_v60 }
 0x72b   :  { %1143 = vtanh.f32 %v418_v62  ;;  %v513_v20 = vrot.slane %v418_v62, 6 }
 0x738   :  { %v1144_v63 = vpop.eup %1143 }
 0x739   :  { %421 = vrot.lane.b32.xlu0 %v1144_v63, %s1189_s28 }
 0x7ab   :  { %v422_v0 = vpop.permute.xlu0 %421 }
 0x7ac   :  { %v1307_v2 = vmul.f32 %v1142_v56, %v422_v0 }
 0x7ae   :  { %v426_v3 = vrot.slane %v1307_v2, 4 }
 0x7b0   :  { %427 = vrot.lane.b32.xlu1 %v426_v3, %s1190_s29 }
 0x822   :  { %v428_v6 = vpop.permute.xlu1 %427 }
 0x823   :  { %1082 = vmatmul.mubr.msk.f32.vlgmr.msra.gmra.mxu0 %vm113_vm2, %v428_v6 }
 0x824   :  { %1092 = vmatpush3.msra.mxu0 %v1239_v4  ;;  %1095 = vmatprep.mubr.msk.f32.mxu0 %vm1186_vm1, %v1185_v1 }
 0x825   :  { %1093 = vmatprep.subr.mxu0 %v1185_v1 }
 0x826   :  { %1094 = vmatpush3.msra.mxu0 %v1244_v5 }
 0x827   :  { %1105 = vmatprep.subr.mxu0 %v1185_v1 }
 0x8e3   :  { %v497_v7 = vpop.f32.mrf.mxu0 }
 0x8e4   :  { %v502_v9 = vrot.slane %v497_v7, 2 }
 0x8e5   :  { %v1083_v10 = vpop.f32.mrf.mxu0 }
 0x8e6   :  { %v504_v12 = vadd.f32 %v502_v9, %v1269_v11 }
 0x8e8   :  { %1145 = vtanh.f32 %v504_v12  ;;  %v1015_v14 = vmul.f32 -1.442695, %v504_v12 }
 0x8ea   :  { %1147 = vpow2.f32 %v1015_v14 }
 0x8f5   :  { %v1146_v13 = vpop.eup %1145 }
 0x8f6   :  { %517 = vrot.lane.b32.xlu0 %v1146_v13, %s1187_s27 }
 0x8f7   :  { %v1148_v15 = vpop.eup %1147 }
 0x8f8   :  { %v508_v16 = vadd.f32 1.0, %v1148_v15 }
 0x8fa   :  { %1149 = vrcp.f32 %v508_v16 }
 0x907   :  { %v1150_v17 = vpop.eup %1149 }
 0x908   :  { %v515_v21 = vmul.f32 %v1150_v17, %v513_v20 }
 0x968   :  { %v518_v18 = vpop.permute.xlu0 %517 }
 0x969   :  { %v520_v19 = vmul.f32 %v1150_v17, %v518_v18 }
 0x96b   :  { %522 = vrot.lane.b32.xlu1 %v520_v19, %s1188_s3 }
 0x9dd   :  { %v523_v22 = vpop.permute.xlu1 %522 }
 0x9de   :  { %v525_v23 = vadd.f32 %v523_v22, %v515_v21 }
 0x9e0   :  { %1151 = vtanh.f32 %v525_v23  ;;  %v617_v39 = vrot.slane %v525_v23, 6 }
 0x9ed   :  { %v1152_v11 = vpop.eup %1151 }
 0x9ee   :  { %528 = vrot.lane.b32.xlu0 %v1152_v11, %s1189_s28 }
 0xa60   :  { %v529_v24 = vpop.permute.xlu0 %528 }
 0xa61   :  { %v1324_v25 = vmul.f32 %v1150_v17, %v529_v24 }
 0xa63   :  { %v533_v26 = vrot.slane %v1324_v25, 6 }
 0xa65   :  { %534 = vrot.lane.b32.xlu1 %v533_v26, %s1190_s29 }
 0xad7   :  { %v535_v28 = vpop.permute.xlu1 %534 }
 0xad8   :  { %1089 = vmatmul.mubr.msk.f32.vlgmr.msra.gmra.mxu1 %vm113_vm2, %v535_v28 }
 0xad9   :  { %1099 = vmatpush3.msra.mxu1 %v1239_v4  ;;  %1102 = vmatprep.mubr.msk.f32.mxu1 %vm1186_vm1, %v1185_v1 }
 0xada   :  { %1100 = vmatprep.subr.mxu1 %v1185_v1 }
 0xadb   :  { %1101 = vmatpush3.msra.mxu1 %v1244_v5 }
 0xb98   :  { %v604_v29 = vpop.f32.mrf.mxu1 }
 0xb99   :  { %v608_v30 = vadd.f32 %v604_v29, %v1267_v8 }
 0xb9a   :  { %v1090_v31 = vpop.f32.mrf.mxu1 }
 0xb9b   :  { %1153 = vtanh.f32 %v608_v30  ;;  %v1017_v33 = vmul.f32 -1.442695, %v608_v30 }
 0xb9d   :  { %1155 = vpow2.f32 %v1017_v33 }
 0xba8   :  { %v1154_v32 = vpop.eup %1153 }
 0xba9   :  { %621 = vrot.lane.b32.xlu0 %v1154_v32, %s1187_s27 }
 0xbaa   :  { %v1156_v34 = vpop.eup %1155 }
 0xbab   :  { %v612_v35 = vadd.f32 1.0, %v1156_v34 }
 0xbad   :  { %1157 = vrcp.f32 %v612_v35 }
 0xbba   :  { %v1158_v36 = vpop.eup %1157 }
 0xbbb   :  { %v619_v40 = vmul.f32 %v1158_v36, %v617_v39 }
 0xc1b   :  { %v622_v37 = vpop.permute.xlu0 %621 }
 0xc1c   :  { %v624_v38 = vmul.f32 %v1158_v36, %v622_v37 }
 0xc1e   :  { %626 = vrot.lane.b32.xlu1 %v624_v38, %s1188_s3 }
 0xc90   :  { %v627_v41 = vpop.permute.xlu1 %626 }
 0xc91   :  { %v629_v42 = vadd.f32 %v627_v41, %v619_v40 }
 0xc93   :  { %1159 = vtanh.f32 %v629_v42 }
 0xca0   :  { %v1160_v43 = vpop.eup %1159 }
 0xca1   :  { %632 = vrot.lane.b32.xlu0 %v1160_v43, %s1189_s28 }
 0xd13   :  { %v633_v44 = vpop.permute.xlu0 %632 }
 0xd14   :  { %v1340_v47 = vmul.f32 %v1158_v36, %v633_v44 }
 0xd16   :  { %637 = vrot.lane.b32.xlu1 %v1340_v47, %s1190_s29 }
 0xd88   :  { %v638_v48 = vpop.permute.xlu1 %637 }
 0xd89   :  { %1096 = vmatmul.mubr.msk.f32.vlgmr.msra.gmra.mxu0 %vm113_vm2, %v638_v48 }
 0xd8a   :  { %1106 = vmatpush3.msra.mxu0 %v1239_v4  ;;  %1109 = vmatprep.mubr.msk.f32.mxu0 %vm1186_vm1, %v1185_v1 }
 0xd8b   :  { %1107 = vmatprep.subr.mxu0 %v1185_v1  ;;  %v723_v1 = vrot.slane %v629_v42, 6 }
 0xd8c   :  { %1108 = vmatpush3.msra.mxu0 %v1244_v5 }
 0xe49   :  { %v707_v49 = vpop.f32.mrf.mxu0 }
 0xe4a   :  { %v712_v50 = vrot.slane %v707_v49, 6 }
 0xe4b   :  { %v1097_v51 = vpop.f32.mrf.mxu0 }
 0xe4c   :  { %v714_v52 = vadd.f32 %v712_v50, %v1267_v8 }
 0xe4e   :  { %1161 = vtanh.f32 %v714_v52  ;;  %v1019_v54 = vmul.f32 -1.442695, %v714_v52 }
 0xe50   :  { %1163 = vpow2.f32 %v1019_v54 }
 0xe5b   :  { %v1162_v53 = vpop.eup %1161 }
 0xe5c   :  { %727 = vrot.lane.b32.xlu0 %v1162_v53, %s1187_s27 }
 0xe5d   :  { %v1164_v55 = vpop.eup %1163 }
 0xe5e   :  { %v718_v4 = vadd.f32 1.0, %v1164_v55 }
 0xe60   :  { %1165 = vrcp.f32 %v718_v4 }
 0xe6d   :  { %v1166_v56 = vpop.eup %1165 }
 0xe6e   :  { %v725_v5 = vmul.f32 %v1166_v56, %v723_v1 }
 0xece   :  { %v728_v57 = vpop.permute.xlu0 %727 }
 0xecf   :  { %v730_v58 = vmul.f32 %v1166_v56, %v728_v57 }
 0xed1   :  { %732 = vrot.lane.b32.xlu1 %v730_v58, %s1188_s3 }
 0xf43   :  { %v733_v59 = vpop.permute.xlu1 %732 }
 0xf44   :  { %v735_v60 = vadd.f32 %v733_v59, %v725_v5 }
 0xf46   :  { %1167 = vtanh.f32 %v735_v60  ;;  %v830_v20 = vrot.slane %v735_v60, 6 }
 0xf53   :  { %v1168_v61 = vpop.eup %1167 }
 0xf54   :  { %738 = vrot.lane.b32.xlu0 %v1168_v61, %s1189_s28 }
 0xfc6   :  { %v739_v62 = vpop.permute.xlu0 %738 }
 0xfc7   :  { %v1354_v63 = vmul.f32 %v1166_v56, %v739_v62 }
 0xfc9   :  { %v743_v0 = vrot.slane %v1354_v63, 2 }
 0xfcb   :  { %744 = vrot.lane.b32.xlu1 %v743_v0, %s1190_s29 }
0x103d   :  { %v745_v6 = vpop.permute.xlu1 %744 }
0x103e   :  { %1103 = vmatmul.mubr.msk.f32.vlgmr.msra.gmra.mxu1 %vm113_vm2, %v745_v6 }
0x10fe   :  { %v814_v7 = vpop.f32.mrf.mxu1 }
0x10ff   :  { %v819_v9 = vrot.slane %v814_v7, 4 }
0x1100   :  { %v1104_v10 = vpop.f32.mrf.mxu1 }
0x1101   :  { %v821_v12 = vadd.f32 %v819_v9, %v1267_v8 }
0x1103   :  { %1169 = vtanh.f32 %v821_v12  ;;  %v1021_v14 = vmul.f32 -1.442695, %v821_v12 }
0x1105   :  { %1171 = vpow2.f32 %v1021_v14 }
0x1110   :  { %v1170_v13 = vpop.eup %1169 }
0x1111   :  { %834 = vrot.lane.b32.xlu0 %v1170_v13, %s1187_s27 }
0x1112   :  { %v1172_v15 = vpop.eup %1171 }
0x1113   :  { %v825_v16 = vadd.f32 1.0, %v1172_v15 }
0x1115   :  { %1173 = vrcp.f32 %v825_v16 }
0x1122   :  { %v1174_v17 = vpop.eup %1173 }
0x1123   :  { %v832_v21 = vmul.f32 %v1174_v17, %v830_v20 }
0x1183   :  { %v835_v18 = vpop.permute.xlu0 %834 }
0x1184   :  { %v837_v19 = vmul.f32 %v1174_v17, %v835_v18 }
0x1186   :  { %839 = vrot.lane.b32.xlu1 %v837_v19, %s1188_s3 }
0x11f8   :  { %v840_v22 = vpop.permute.xlu1 %839 }
0x11f9   :  { %v842_v23 = vadd.f32 %v840_v22, %v832_v21 }
0x11fb   :  { %1175 = vtanh.f32 %v842_v23 }
0x1208   :  { %v1176_v11 = vpop.eup %1175 }
0x1209   :  { %845 = vrot.lane.b32.xlu0 %v1176_v11, %s1189_s28 }
0x127b   :  { %v846_v24 = vpop.permute.xlu0 %845 }
0x127c   :  { %v848_v28 = vmul.f32 %v1174_v17, %v846_v24 }
0x127e   :  { %v850_v29 = vrot.slane %v848_v28, 4 }
0x1280   :  { %851 = vrot.lane.b32.xlu1 %v850_v29, %s1190_s29 }
0x12f2   :  { %v852_v30 = vpop.permute.xlu1 %851 }
0x12f3   :  { %1110 = vmatmul.mubr.msk.f32.vlgmr.msra.gmra.mxu0 %vm113_vm2, %v852_v30 }
0x13b3   :  { %v921_v31 = vpop.f32.mrf.mxu0 }
0x13b4   :  { %v926_v32 = vrot.slane %v921_v31, 2 }
0x13b5   :  { %v1111_v33 = vpop.f32.mrf.mxu0 }
0x13b6   :  { %v928_v34 = vadd.f32 %v926_v32, %v1267_v8  ;;  %v937_v8 = vrot.slane %v842_v23, 6 }
0x13b8   :  { %1177 = vtanh.f32 %v928_v34  ;;  %v1023_v36 = vmul.f32 -1.442695, %v928_v34 }
0x13ba   :  { %1179 = vpow2.f32 %v1023_v36 }
0x13c5   :  { %v1178_v35 = vpop.eup %1177 }
0x13c6   :  { %941 = vrot.lane.b32.xlu0 %v1178_v35, %s1187_s27 }
0x13c7   :  { %v1180_v37 = vpop.eup %1179 }
0x13c8   :  { %v932_v38 = vadd.f32 1.0, %v1180_v37 }
0x13ca   :  { %1181 = vrcp.f32 %v932_v38 }
0x13d7   :  { %v1182_v39 = vpop.eup %1181 }
0x13d8   :  { %v939_v42 = vmul.f32 %v1182_v39, %v937_v8 }
0x1438   :  { %v942_v40 = vpop.permute.xlu0 %941 }
0x1439   :  { %v944_v41 = vmul.f32 %v1182_v39, %v942_v40 }
0x143b   :  { %946 = vrot.lane.b32.xlu1 %v944_v41, %s1188_s3 }
0x143f   :  { %957 = vrot.lane.b32.xlu1 %v319_v46, %s1187_s27 }
0x1443   :  { %964 = vrot.lane.b32.xlu1 %v1340_v47, %s1188_s3 }
0x1447   :  { %970 = vrot.lane.b32.xlu1 %v850_v29, %s1191_s30 }
0x14ad   :  { %v947_v43 = vpop.permute.xlu1 %946 }
0x14ae   :  { %v949_v44 = vadd.f32 %v947_v43, %v939_v42 }
0x14b0   :  { %1183 = vtanh.f32 %v949_v44 }
0x14b1   :  { %v958_v47 = vpop.permute.xlu1 %957 }
0x14b2   :  { %v978_v51 = vsel %vm113_vm2, %v1276_v27, %v958_v47 }
0x14b5   :  { %v965_v52 = vpop.permute.xlu1 %964 }
0x14bd   :  { %v1184_v48 = vpop.eup %1183 }
0x14be   :  { %952 = vrot.lane.b32.xlu0 %v1184_v48, %s1189_s28 }
0x14c2   :  { %960 = vrot.lane.b32.xlu0 %v426_v3, %s1192_s6  ;;  %v971_v3 = vpop.permute.xlu1 %970 }
0x14c6   :  { %967 = vrot.lane.b32.xlu0 %v743_v0, %s1189_s28 }
0x1530   :  { %v953_v45 = vpop.permute.xlu0 %952 }
0x1531   :  { %v955_v46 = vmul.f32 %v1182_v39, %v953_v45 }
0x1533   :  { %v974_v49 = vrot.slane %v955_v46, 6  ;;  %992 = vrot.lane.b32.xlu1 %v955_v46, %s1190_s29 }
0x1534   :  { %v961_v50 = vpop.permute.xlu0 %960 }
0x1535   :  { %975 = vrot.lane.b32.xlu0 %v974_v49, %s1193_s7  ;;  %v980_v53 = vsel %vm979_vm3, %v978_v51, %v961_v50 }
0x1536   :  { %v982_v2 = vsel %vm981_vm4, %v980_v53, %v533_v26 }
0x1537   :  { %v984_v54 = vsel %vm983_vm5, %v982_v2, %v965_v52 }
0x1538   :  { %v968_v55 = vpop.permute.xlu0 %967 }
0x1539   :  { %v986_v4 = vsel %vm985_vm6, %v984_v54, %v968_v55 }
0x153a   :  { %v988_v27 = vsel %vm987_vm8, %v986_v4, %v971_v3 }
0x15a5   :  { %v993_v56 = vpop.permute.xlu1 %992 }
0x15a6   :  { %v995_v57 = vsel %vm113_vm2, %v993_v56, %v949_v44 }
0x15a7   :  { %997 = vst.msk [vmem:[%s1393_s5 - $0x6] sm:$0xc0] %vm996_vm7, %v995_v57  ;;  %v976_v58 = vpop.permute.xlu0 %975 }
0x15a8   :  { %v990_v25 = vsel %vm989_vm9, %v988_v27, %v976_v58 }
0x15a9   :  { %991 = vst [vmem:[%s1394_s4] sm:$0x3] %v990_v25 }

</bundles_post_ra>
